<compile_context>
chip_gen: v6e
topology: v6e:2x2x1
jax: 0.10.0
libtpu: 0.0.40
codegen_flags: <defaults>
</compile_context>

<pallas_src>
import functools
import math

import jax
import jax.numpy as jnp
from jax import lax
from jax.experimental import pallas as pl
from jax.experimental.pallas import tpu as pltpu


# ---------------------------------------------------------------------------
# Fused kernel: one grid step == one batch element
# ---------------------------------------------------------------------------
def _mha_fused_kernel(num_heads, head_dim, with_attn,
                      x_ref, qkv_w_ref, qkv_b_ref, o_w_ref, o_b_ref,
                      *out_refs):
    o_ref = out_refs[0]
    attn_ref = out_refs[1] if with_attn else None

    x = x_ref[...]                                   # (S, Din)
    S = x.shape[0]
    E = num_heads * head_dim
    scale = 1.0 / math.sqrt(head_dim)

    # Fused QKV projection for this batch element (one MXU matmul).
    # Column layout (matches torch reshape(B,S,H,3*hd) + chunk):
    # head h occupies columns [h*3*hd, (h+1)*3*hd) as [q_h | k_h | v_h].
    qkv = jnp.dot(x, qkv_w_ref[...], preferred_element_type=jnp.float32)
    qkv = qkv + qkv_b_ref[...]                       # (S, 3E), f32

    # Output projection folded into the head loop:
    #   o = b_o + sum_h vals_h @ W_o[h*hd:(h+1)*hd, :]
    acc = jnp.broadcast_to(o_b_ref[...], (S, E)).astype(jnp.float32)

    # TODO(synk): optional attention-mask path (mask is None in this forward).
    for h in range(num_heads):                       # static unroll, heads fused
        base = 3 * head_dim * h
        q = qkv[:, base:base + head_dim] * scale     # scale folded into q (S,hd)
        k = qkv[:, base + head_dim:base + 2 * head_dim]
        v = qkv[:, base + 2 * head_dim:base + 3 * head_dim]

        # q @ k^T without materializing a transposed K: contract last dims.
        scores = lax.dot_general(q, k, (((1,), (1,)), ((), ())),
                                 preferred_element_type=jnp.float32)  # (S, S)

        m = jnp.max(scores, axis=-1, keepdims=True)
        p = jnp.exp(scores - m)
        denom = jnp.sum(p, axis=-1, keepdims=True)
        inv = pl.reciprocal(denom, approx=True)      # EUP slot, ~free

        # PV first, then normalize the (S, hd) result (cheaper than (S, S)).
        vals_h = jnp.dot(p, v, preferred_element_type=jnp.float32) * inv

        if with_attn:
            attn_ref[h, :, :] = (p * inv).astype(attn_ref.dtype)

        w_o_h = o_w_ref[h * head_dim:(h + 1) * head_dim, :]   # (hd, E)
        acc = acc + jnp.dot(vals_h.astype(w_o_h.dtype), w_o_h,
                            preferred_element_type=jnp.float32)

    o_ref[...] = acc.astype(o_ref.dtype)


# ---------------------------------------------------------------------------
# Wrapper: single pallas_call for the whole forward
# ---------------------------------------------------------------------------
def multihead_attention(x, params, num_heads, return_attention=False):
    """Pallas implementation of MultiheadAttention.forward (mask=None)."""
    B, S, Din = x.shape
    E = params["o_w"].shape[1]
    head_dim = E // num_heads

    kernel = functools.partial(_mha_fused_kernel, num_heads, head_dim,
                               return_attention)

    in_specs = [
        pl.BlockSpec((pl.Squeezed(), S, Din), lambda b: (b, 0, 0)),   # x
        pl.BlockSpec((Din, 3 * E), lambda b: (0, 0)),                 # qkv_w
        pl.BlockSpec((1, 3 * E), lambda b: (0, 0)),                   # qkv_b
        pl.BlockSpec((E, E), lambda b: (0, 0)),                       # o_w
        pl.BlockSpec((1, E), lambda b: (0, 0)),                       # o_b
    ]
    o_spec = pl.BlockSpec((pl.Squeezed(), S, E), lambda b: (b, 0, 0))
    o_sds = jax.ShapeDtypeStruct((B, S, E), x.dtype)

    compiler_params = pltpu.CompilerParams(dimension_semantics=("parallel",))
    args = (x,
            params["qkv_w"], params["qkv_b"].reshape(1, 3 * E),
            params["o_w"], params["o_b"].reshape(1, E))

    if return_attention:
        attn_spec = pl.BlockSpec((pl.Squeezed(), num_heads, S, S),
                                 lambda b: (b, 0, 0, 0))
        attn_sds = jax.ShapeDtypeStruct((B, num_heads, S, S), jnp.float32)
        o, attn = pl.pallas_call(
            kernel,
            out_shape=(o_sds, attn_sds),
            grid=(B,),
            in_specs=in_specs,
            out_specs=(o_spec, attn_spec),
            compiler_params=compiler_params,
        )(*args)
        return o, attn

    o = pl.pallas_call(
        kernel,
        out_shape=o_sds,
        grid=(B,),
        in_specs=in_specs,
        out_specs=o_spec,
        compiler_params=compiler_params,
    )(*args)
    return o


# ---------------------------------------------------------------------------
# Pure-JAX reference (mirrors the PyTorch module exactly)
# ---------------------------------------------------------------------------
def reference_mha(x, params, num_heads):
    B, S, Din = x.shape
    E = params["o_w"].shape[1]
    head_dim = E // num_heads
    qkv = x @ params["qkv_w"] + params["qkv_b"]
    qkv = qkv.reshape(B, S, num_heads, 3 * head_dim).transpose(0, 2, 1, 3)
    q, k, v = jnp.split(qkv, 3, axis=-1)
    logits = jnp.einsum("bhqd,bhkd->bhqk", q, k) / math.sqrt(head_dim)
    attn = jax.nn.softmax(logits, axis=-1)
    vals = jnp.einsum("bhqk,bhkd->bhqd", attn, v)
    vals = vals.transpose(0, 2, 1, 3).reshape(B, S, E)
    return vals @ params["o_w"] + params["o_b"], attn


# ---------------------------------------------------------------------------
# Main
# ---------------------------------------------------------------------------
if __name__ == "__main__":
    B, S = 2, 8
    input_dim = 32
    embed_dim = 32
    num_heads = 4

    key = jax.random.PRNGKey(0)
    kx, kw1, kb1, kw2, kb2 = jax.random.split(key, 5)

    x = jax.random.normal(kx, (B, S, input_dim), dtype=jnp.float32)

    # PyTorch Linear stores W as [out, in]; we pass W^T ([in, out]) so the
    # kernel computes x @ W^T + b.
    bound_qkv = 1.0 / math.sqrt(input_dim)
    bound_o = 1.0 / math.sqrt(embed_dim)
    params = {
        "qkv_w": jax.random.uniform(
            kw1, (input_dim, 3 * embed_dim), jnp.float32, -bound_qkv, bound_qkv
        ),
        "qkv_b": jax.random.uniform(
            kb1, (3 * embed_dim,), jnp.float32, -bound_qkv, bound_qkv
        ),
        "o_w": jax.random.uniform(
            kw2, (embed_dim, embed_dim), jnp.float32, -bound_o, bound_o
        ),
        "o_b": jax.random.uniform(
            kb2, (embed_dim,), jnp.float32, -bound_o, bound_o
        ),
    }

    # Variant with attention output (return_attention=True).
    out, attn = multihead_attention(x, params, num_heads, return_attention=True)
    out = jax.block_until_ready(out)
    attn = jax.block_until_ready(attn)

    # Variant without attention output (no [B,H,S,S] HBM write).
    out_noattn = jax.block_until_ready(
        multihead_attention(x, params, num_heads, return_attention=False)
    )

    ref_out, ref_attn = reference_mha(x, params, num_heads)

    assert out.shape == (B, S, embed_dim)
    assert attn.shape == (B, num_heads, S, S)
    assert out_noattn.shape == (B, S, embed_dim)
    # Tolerance accommodates the approx (EUP) reciprocal in the softmax
    # normalization; structural errors would be O(1).
    assert jnp.allclose(out, ref_out, atol=5e-3, rtol=5e-3), "output mismatch"
    assert jnp.allclose(out_noattn, ref_out, atol=5e-3, rtol=5e-3), "output mismatch (no-attn variant)"
    assert jnp.allclose(attn, ref_attn, atol=5e-3, rtol=5e-3), "attention mismatch"

    print("KERNEL_OK")
</pallas_src>

<mosaic_0001>
module attributes {stable_mosaic.version = 11 : i64} {
  func.func @_mha_fused_kernel(%arg0: i32, %arg1: memref<1x8x32xf32, #tpu.memory_space<vmem>>, %arg2: memref<32x96xf32, #tpu.memory_space<vmem>>, %arg3: memref<1x96xf32, #tpu.memory_space<vmem>>, %arg4: memref<32x32xf32, #tpu.memory_space<vmem>>, %arg5: memref<1x32xf32, #tpu.memory_space<vmem>>, %arg6: memref<1x8x32xf32, #tpu.memory_space<vmem>>, %arg7: memref<1x4x8x8xf32, #tpu.memory_space<vmem>>) attributes {dimension_semantics = [#tpu.dimension_semantics<parallel>], iteration_bounds = array<i64: 2>, scalar_prefetch = 0 : i64, scratch_operands = 0 : i64, tpu.core_type = #tpu.core_type<tc>, window_params = [{transform_indices = @transform_0, window_bounds = array<i64: 1, 8, 32>}, {pipeline_mode = #tpu.pipeline_mode<synchronous>, transform_indices = @transform_1, window_bounds = array<i64: 32, 96>}, {pipeline_mode = #tpu.pipeline_mode<synchronous>, transform_indices = @transform_2, window_bounds = array<i64: 1, 96>}, {pipeline_mode = #tpu.pipeline_mode<synchronous>, transform_indices = @transform_3, window_bounds = array<i64: 32, 32>}, {pipeline_mode = #tpu.pipeline_mode<synchronous>, transform_indices = @transform_4, window_bounds = array<i64: 1, 32>}, {transform_indices = @transform_5, window_bounds = array<i64: 1, 8, 32>}, {transform_indices = @transform_6, window_bounds = array<i64: 1, 4, 8, 8>}]} {
    %c0 = arith.constant 0 : index
    %c0_0 = arith.constant 0 : index
    %c0_1 = arith.constant 0 : index
    %0 = vector.load %arg1[%c0, %c0_0, %c0_1] : memref<1x8x32xf32, #tpu.memory_space<vmem>>, vector<1x8x32xf32>
    %1 = vector.shape_cast %0 : vector<1x8x32xf32> to vector<8x32xf32>
    %c0_2 = arith.constant 0 : index
    %c0_3 = arith.constant 0 : index
    %2 = vector.load %arg2[%c0_2, %c0_3] : memref<32x96xf32, #tpu.memory_space<vmem>>, vector<32x96xf32>
    %cst = arith.constant dense<0.000000e+00> : vector<8x96xf32>
    %3 = tpu.matmul %1, %2, %cst {dimension_numbers = #tpu.dot_dimension_numbers<[1], [0], [0], [1], [0, 0, 1, 1], [], []>} : vector<8x32xf32>, vector<32x96xf32>, vector<8x96xf32> -> vector<8x96xf32>
    %c0_4 = arith.constant 0 : index
    %c0_5 = arith.constant 0 : index
    %4 = vector.load %arg3[%c0_4, %c0_5] : memref<1x96xf32, #tpu.memory_space<vmem>>, vector<1x96xf32>
    %5 = vector.broadcast %4 : vector<1x96xf32> to vector<8x96xf32>
    %6 = arith.addf %3, %5 : vector<8x96xf32>
    %c0_6 = arith.constant 0 : index
    %c0_7 = arith.constant 0 : index
    %7 = vector.load %arg5[%c0_6, %c0_7] : memref<1x32xf32, #tpu.memory_space<vmem>>, vector<1x32xf32>
    %8 = vector.shape_cast %7 : vector<1x32xf32> to vector<1x32xf32>
    %9 = vector.broadcast %8 : vector<1x32xf32> to vector<8x32xf32>
    %10 = vector.extract_strided_slice %6 {offsets = [0, 0], sizes = [8, 8], strides = [1, 1]} : vector<8x96xf32> to vector<8x8xf32>
    %cst_8 = arith.constant 0.353553385 : f32
    %11 = vector.broadcast %cst_8 : f32 to vector<8x8xf32>
    %12 = arith.mulf %10, %11 : vector<8x8xf32>
    %13 = vector.extract_strided_slice %6 {offsets = [0, 8], sizes = [8, 8], strides = [1, 1]} : vector<8x96xf32> to vector<8x8xf32>
    %14 = vector.extract_strided_slice %6 {offsets = [0, 16], sizes = [8, 8], strides = [1, 1]} : vector<8x96xf32> to vector<8x8xf32>
    %cst_9 = arith.constant dense<0.000000e+00> : vector<8x8xf32>
    %15 = tpu.matmul %12, %13, %cst_9 {dimension_numbers = #tpu.dot_dimension_numbers<[1], [1], [0], [0], [0, 0, 1, 0], [], []>} : vector<8x8xf32>, vector<8x8xf32>, vector<8x8xf32> -> vector<8x8xf32>
    %cst_10 = arith.constant dense<0xFF800000> : vector<8xf32>
    %16 = vector.multi_reduction <maximumf>, %15, %cst_10 [1] : vector<8x8xf32> to vector<8xf32>
    %17 = vector.shape_cast %16 : vector<8xf32> to vector<8x1xf32>
    %18 = vector.broadcast %17 : vector<8x1xf32> to vector<8x8xf32>
    %19 = arith.subf %15, %18 : vector<8x8xf32>
    %20 = math.exp %19 : vector<8x8xf32>
    %cst_11 = arith.constant dense<0.000000e+00> : vector<8xf32>
    %21 = vector.multi_reduction <add>, %20, %cst_11 [1] : vector<8x8xf32> to vector<8xf32>
    %22 = vector.shape_cast %21 : vector<8xf32> to vector<8x1xf32>
    %23 = tpu.reciprocal %22 {approx = true} : vector<8x1xf32> -> vector<8x1xf32>
    %cst_12 = arith.constant dense<0.000000e+00> : vector<8x8xf32>
    %24 = tpu.matmul %20, %14, %cst_12 {dimension_numbers = #tpu.dot_dimension_numbers<[1], [0], [0], [1], [0, 0, 1, 1], [], []>} : vector<8x8xf32>, vector<8x8xf32>, vector<8x8xf32> -> vector<8x8xf32>
    %25 = vector.broadcast %23 : vector<8x1xf32> to vector<8x8xf32>
    %26 = arith.mulf %24, %25 : vector<8x8xf32>
    %27 = vector.broadcast %23 : vector<8x1xf32> to vector<8x8xf32>
    %28 = arith.mulf %20, %27 : vector<8x8xf32>
    %c0_13 = arith.constant 0 : index
    %c0_14 = arith.constant 0 : index
    %c0_15 = arith.constant 0 : index
    %c0_16 = arith.constant 0 : index
    %29 = vector.load %arg7[%c0_13, %c0_14, %c0_15, %c0_16] : memref<1x4x8x8xf32, #tpu.memory_space<vmem>>, vector<1x1x8x8xf32>
    %30 = vector.shape_cast %29 : vector<1x1x8x8xf32> to vector<8x8xf32>
    %31 = vector.shape_cast %28 : vector<8x8xf32> to vector<1x1x8x8xf32>
    tpu.vector_store %arg7[%c0_13, %c0_14, %c0_15, %c0_16], %31 {strides = array<i32>} : memref<1x4x8x8xf32, #tpu.memory_space<vmem>>, vector<1x1x8x8xf32>,
    %c0_17 = arith.constant 0 : index
    %c0_18 = arith.constant 0 : index
    %32 = vector.load %arg4[%c0_17, %c0_18] : memref<32x32xf32, #tpu.memory_space<vmem>>, vector<8x32xf32>
    %cst_19 = arith.constant dense<0.000000e+00> : vector<8x32xf32>
    %33 = tpu.matmul %26, %32, %cst_19 {dimension_numbers = #tpu.dot_dimension_numbers<[1], [0], [0], [1], [0, 0, 1, 1], [], []>} : vector<8x8xf32>, vector<8x32xf32>, vector<8x32xf32> -> vector<8x32xf32>
    %34 = arith.addf %9, %33 : vector<8x32xf32>
    %35 = vector.extract_strided_slice %6 {offsets = [0, 24], sizes = [8, 8], strides = [1, 1]} : vector<8x96xf32> to vector<8x8xf32>
    %cst_20 = arith.constant 0.353553385 : f32
    %36 = vector.broadcast %cst_20 : f32 to vector<8x8xf32>
    %37 = arith.mulf %35, %36 : vector<8x8xf32>
    %38 = vector.extract_strided_slice %6 {offsets = [0, 32], sizes = [8, 8], strides = [1, 1]} : vector<8x96xf32> to vector<8x8xf32>
    %39 = vector.extract_strided_slice %6 {offsets = [0, 40], sizes = [8, 8], strides = [1, 1]} : vector<8x96xf32> to vector<8x8xf32>
    %cst_21 = arith.constant dense<0.000000e+00> : vector<8x8xf32>
    %40 = tpu.matmul %37, %38, %cst_21 {dimension_numbers = #tpu.dot_dimension_numbers<[1], [1], [0], [0], [0, 0, 1, 0], [], []>} : vector<8x8xf32>, vector<8x8xf32>, vector<8x8xf32> -> vector<8x8xf32>
    %cst_22 = arith.constant dense<0xFF800000> : vector<8xf32>
    %41 = vector.multi_reduction <maximumf>, %40, %cst_22 [1] : vector<8x8xf32> to vector<8xf32>
    %42 = vector.shape_cast %41 : vector<8xf32> to vector<8x1xf32>
    %43 = vector.broadcast %42 : vector<8x1xf32> to vector<8x8xf32>
    %44 = arith.subf %40, %43 : vector<8x8xf32>
    %45 = math.exp %44 : vector<8x8xf32>
    %cst_23 = arith.constant dense<0.000000e+00> : vector<8xf32>
    %46 = vector.multi_reduction <add>, %45, %cst_23 [1] : vector<8x8xf32> to vector<8xf32>
    %47 = vector.shape_cast %46 : vector<8xf32> to vector<8x1xf32>
    %48 = tpu.reciprocal %47 {approx = true} : vector<8x1xf32> -> vector<8x1xf32>
    %cst_24 = arith.constant dense<0.000000e+00> : vector<8x8xf32>
    %49 = tpu.matmul %45, %39, %cst_24 {dimension_numbers = #tpu.dot_dimension_numbers<[1], [0], [0], [1], [0, 0, 1, 1], [], []>} : vector<8x8xf32>, vector<8x8xf32>, vector<8x8xf32> -> vector<8x8xf32>
    %50 = vector.broadcast %48 : vector<8x1xf32> to vector<8x8xf32>
    %51 = arith.mulf %49, %50 : vector<8x8xf32>
    %52 = vector.broadcast %48 : vector<8x1xf32> to vector<8x8xf32>
    %53 = arith.mulf %45, %52 : vector<8x8xf32>
    %c0_25 = arith.constant 0 : index
    %c1 = arith.constant 1 : index
    %c0_26 = arith.constant 0 : index
    %c0_27 = arith.constant 0 : index
    %54 = vector.load %arg7[%c0_25, %c1, %c0_26, %c0_27] : memref<1x4x8x8xf32, #tpu.memory_space<vmem>>, vector<1x1x8x8xf32>
    %55 = vector.shape_cast %54 : vector<1x1x8x8xf32> to vector<8x8xf32>
    %56 = vector.shape_cast %53 : vector<8x8xf32> to vector<1x1x8x8xf32>
    tpu.vector_store %arg7[%c0_25, %c1, %c0_26, %c0_27], %56 {strides = array<i32>} : memref<1x4x8x8xf32, #tpu.memory_space<vmem>>, vector<1x1x8x8xf32>,
    %c8 = arith.constant 8 : index
    %c0_28 = arith.constant 0 : index
    %57 = vector.load %arg4[%c8, %c0_28] : memref<32x32xf32, #tpu.memory_space<vmem>>, vector<8x32xf32>
    %cst_29 = arith.constant dense<0.000000e+00> : vector<8x32xf32>
    %58 = tpu.matmul %51, %57, %cst_29 {dimension_numbers = #tpu.dot_dimension_numbers<[1], [0], [0], [1], [0, 0, 1, 1], [], []>} : vector<8x8xf32>, vector<8x32xf32>, vector<8x32xf32> -> vector<8x32xf32>
    %59 = arith.addf %34, %58 : vector<8x32xf32>
    %60 = vector.extract_strided_slice %6 {offsets = [0, 48], sizes = [8, 8], strides = [1, 1]} : vector<8x96xf32> to vector<8x8xf32>
    %cst_30 = arith.constant 0.353553385 : f32
    %61 = vector.broadcast %cst_30 : f32 to vector<8x8xf32>
    %62 = arith.mulf %60, %61 : vector<8x8xf32>
    %63 = vector.extract_strided_slice %6 {offsets = [0, 56], sizes = [8, 8], strides = [1, 1]} : vector<8x96xf32> to vector<8x8xf32>
    %64 = vector.extract_strided_slice %6 {offsets = [0, 64], sizes = [8, 8], strides = [1, 1]} : vector<8x96xf32> to vector<8x8xf32>
    %cst_31 = arith.constant dense<0.000000e+00> : vector<8x8xf32>
    %65 = tpu.matmul %62, %63, %cst_31 {dimension_numbers = #tpu.dot_dimension_numbers<[1], [1], [0], [0], [0, 0, 1, 0], [], []>} : vector<8x8xf32>, vector<8x8xf32>, vector<8x8xf32> -> vector<8x8xf32>
    %cst_32 = arith.constant dense<0xFF800000> : vector<8xf32>
    %66 = vector.multi_reduction <maximumf>, %65, %cst_32 [1] : vector<8x8xf32> to vector<8xf32>
    %67 = vector.shape_cast %66 : vector<8xf32> to vector<8x1xf32>
    %68 = vector.broadcast %67 : vector<8x1xf32> to vector<8x8xf32>
    %69 = arith.subf %65, %68 : vector<8x8xf32>
    %70 = math.exp %69 : vector<8x8xf32>
    %cst_33 = arith.constant dense<0.000000e+00> : vector<8xf32>
    %71 = vector.multi_reduction <add>, %70, %cst_33 [1] : vector<8x8xf32> to vector<8xf32>
    %72 = vector.shape_cast %71 : vector<8xf32> to vector<8x1xf32>
    %73 = tpu.reciprocal %72 {approx = true} : vector<8x1xf32> -> vector<8x1xf32>
    %cst_34 = arith.constant dense<0.000000e+00> : vector<8x8xf32>
    %74 = tpu.matmul %70, %64, %cst_34 {dimension_numbers = #tpu.dot_dimension_numbers<[1], [0], [0], [1], [0, 0, 1, 1], [], []>} : vector<8x8xf32>, vector<8x8xf32>, vector<8x8xf32> -> vector<8x8xf32>
    %75 = vector.broadcast %73 : vector<8x1xf32> to vector<8x8xf32>
    %76 = arith.mulf %74, %75 : vector<8x8xf32>
    %77 = vector.broadcast %73 : vector<8x1xf32> to vector<8x8xf32>
    %78 = arith.mulf %70, %77 : vector<8x8xf32>
    %c0_35 = arith.constant 0 : index
    %c2 = arith.constant 2 : index
    %c0_36 = arith.constant 0 : index
    %c0_37 = arith.constant 0 : index
    %79 = vector.load %arg7[%c0_35, %c2, %c0_36, %c0_37] : memref<1x4x8x8xf32, #tpu.memory_space<vmem>>, vector<1x1x8x8xf32>
    %80 = vector.shape_cast %79 : vector<1x1x8x8xf32> to vector<8x8xf32>
    %81 = vector.shape_cast %78 : vector<8x8xf32> to vector<1x1x8x8xf32>
    tpu.vector_store %arg7[%c0_35, %c2, %c0_36, %c0_37], %81 {strides = array<i32>} : memref<1x4x8x8xf32, #tpu.memory_space<vmem>>, vector<1x1x8x8xf32>,
    %c16 = arith.constant 16 : index
    %c0_38 = arith.constant 0 : index
    %82 = vector.load %arg4[%c16, %c0_38] : memref<32x32xf32, #tpu.memory_space<vmem>>, vector<8x32xf32>
    %cst_39 = arith.constant dense<0.000000e+00> : vector<8x32xf32>
    %83 = tpu.matmul %76, %82, %cst_39 {dimension_numbers = #tpu.dot_dimension_numbers<[1], [0], [0], [1], [0, 0, 1, 1], [], []>} : vector<8x8xf32>, vector<8x32xf32>, vector<8x32xf32> -> vector<8x32xf32>
    %84 = arith.addf %59, %83 : vector<8x32xf32>
    %85 = vector.extract_strided_slice %6 {offsets = [0, 72], sizes = [8, 8], strides = [1, 1]} : vector<8x96xf32> to vector<8x8xf32>
    %cst_40 = arith.constant 0.353553385 : f32
    %86 = vector.broadcast %cst_40 : f32 to vector<8x8xf32>
    %87 = arith.mulf %85, %86 : vector<8x8xf32>
    %88 = vector.extract_strided_slice %6 {offsets = [0, 80], sizes = [8, 8], strides = [1, 1]} : vector<8x96xf32> to vector<8x8xf32>
    %89 = vector.extract_strided_slice %6 {offsets = [0, 88], sizes = [8, 8], strides = [1, 1]} : vector<8x96xf32> to vector<8x8xf32>
    %cst_41 = arith.constant dense<0.000000e+00> : vector<8x8xf32>
    %90 = tpu.matmul %87, %88, %cst_41 {dimension_numbers = #tpu.dot_dimension_numbers<[1], [1], [0], [0], [0, 0, 1, 0], [], []>} : vector<8x8xf32>, vector<8x8xf32>, vector<8x8xf32> -> vector<8x8xf32>
    %cst_42 = arith.constant dense<0xFF800000> : vector<8xf32>
    %91 = vector.multi_reduction <maximumf>, %90, %cst_42 [1] : vector<8x8xf32> to vector<8xf32>
    %92 = vector.shape_cast %91 : vector<8xf32> to vector<8x1xf32>
    %93 = vector.broadcast %92 : vector<8x1xf32> to vector<8x8xf32>
    %94 = arith.subf %90, %93 : vector<8x8xf32>
    %95 = math.exp %94 : vector<8x8xf32>
    %cst_43 = arith.constant dense<0.000000e+00> : vector<8xf32>
    %96 = vector.multi_reduction <add>, %95, %cst_43 [1] : vector<8x8xf32> to vector<8xf32>
    %97 = vector.shape_cast %96 : vector<8xf32> to vector<8x1xf32>
    %98 = tpu.reciprocal %97 {approx = true} : vector<8x1xf32> -> vector<8x1xf32>
    %cst_44 = arith.constant dense<0.000000e+00> : vector<8x8xf32>
    %99 = tpu.matmul %95, %89, %cst_44 {dimension_numbers = #tpu.dot_dimension_numbers<[1], [0], [0], [1], [0, 0, 1, 1], [], []>} : vector<8x8xf32>, vector<8x8xf32>, vector<8x8xf32> -> vector<8x8xf32>
    %100 = vector.broadcast %98 : vector<8x1xf32> to vector<8x8xf32>
    %101 = arith.mulf %99, %100 : vector<8x8xf32>
    %102 = vector.broadcast %98 : vector<8x1xf32> to vector<8x8xf32>
    %103 = arith.mulf %95, %102 : vector<8x8xf32>
    %c0_45 = arith.constant 0 : index
    %c3 = arith.constant 3 : index
    %c0_46 = arith.constant 0 : index
    %c0_47 = arith.constant 0 : index
    %104 = vector.load %arg7[%c0_45, %c3, %c0_46, %c0_47] : memref<1x4x8x8xf32, #tpu.memory_space<vmem>>, vector<1x1x8x8xf32>
    %105 = vector.shape_cast %104 : vector<1x1x8x8xf32> to vector<8x8xf32>
    %106 = vector.shape_cast %103 : vector<8x8xf32> to vector<1x1x8x8xf32>
    tpu.vector_store %arg7[%c0_45, %c3, %c0_46, %c0_47], %106 {strides = array<i32>} : memref<1x4x8x8xf32, #tpu.memory_space<vmem>>, vector<1x1x8x8xf32>,
    %c24 = arith.constant 24 : index
    %c0_48 = arith.constant 0 : index
    %107 = vector.load %arg4[%c24, %c0_48] : memref<32x32xf32, #tpu.memory_space<vmem>>, vector<8x32xf32>
    %cst_49 = arith.constant dense<0.000000e+00> : vector<8x32xf32>
    %108 = tpu.matmul %101, %107, %cst_49 {dimension_numbers = #tpu.dot_dimension_numbers<[1], [0], [0], [1], [0, 0, 1, 1], [], []>} : vector<8x8xf32>, vector<8x32xf32>, vector<8x32xf32> -> vector<8x32xf32>
    %109 = arith.addf %84, %108 : vector<8x32xf32>
    %c0_50 = arith.constant 0 : index
    %c0_51 = arith.constant 0 : index
    %c0_52 = arith.constant 0 : index
    %110 = vector.load %arg6[%c0_50, %c0_51, %c0_52] : memref<1x8x32xf32, #tpu.memory_space<vmem>>, vector<1x8x32xf32>
    %111 = vector.shape_cast %110 : vector<1x8x32xf32> to vector<8x32xf32>
    %112 = vector.shape_cast %109 : vector<8x32xf32> to vector<1x8x32xf32>
    tpu.vector_store %arg6[%c0_50, %c0_51, %c0_52], %112 {strides = array<i32>} : memref<1x8x32xf32, #tpu.memory_space<vmem>>, vector<1x8x32xf32>,
    return
  }
  func.func @transform_0(%arg0: i32) -> (i32, i32, i32) {
    %c0_i32 = arith.constant 0 : i32
    %c0_i32_0 = arith.constant 0 : i32
    %c0_i32_1 = arith.constant 0 : i32
    return %arg0, %c0_i32, %c0_i32_0 : i32, i32, i32
  }
  func.func @transform_1(%arg0: i32) -> (i32, i32) {
    %c0_i32 = arith.constant 0 : i32
    %c0_i32_0 = arith.constant 0 : i32
    %c0_i32_1 = arith.constant 0 : i32
    return %c0_i32, %c0_i32_0 : i32, i32
  }
  func.func @transform_2(%arg0: i32) -> (i32, i32) {
    %c0_i32 = arith.constant 0 : i32
    %c0_i32_0 = arith.constant 0 : i32
    %c0_i32_1 = arith.constant 0 : i32
    return %c0_i32, %c0_i32_0 : i32, i32
  }
  func.func @transform_3(%arg0: i32) -> (i32, i32) {
    %c0_i32 = arith.constant 0 : i32
    %c0_i32_0 = arith.constant 0 : i32
    %c0_i32_1 = arith.constant 0 : i32
    return %c0_i32, %c0_i32_0 : i32, i32
  }
  func.func @transform_4(%arg0: i32) -> (i32, i32) {
    %c0_i32 = arith.constant 0 : i32
    %c0_i32_0 = arith.constant 0 : i32
    %c0_i32_1 = arith.constant 0 : i32
    return %c0_i32, %c0_i32_0 : i32, i32
  }
  func.func @transform_5(%arg0: i32) -> (i32, i32, i32) {
    %c0_i32 = arith.constant 0 : i32
    %c0_i32_0 = arith.constant 0 : i32
    %c0_i32_1 = arith.constant 0 : i32
    return %arg0, %c0_i32, %c0_i32_0 : i32, i32, i32
  }
  func.func @transform_6(%arg0: i32) -> (i32, i32, i32, i32) {
    %c0_i32 = arith.constant 0 : i32
    %c0_i32_0 = arith.constant 0 : i32
    %c0_i32_1 = arith.constant 0 : i32
    %c0_i32_2 = arith.constant 0 : i32
    return %arg0, %c0_i32, %c0_i32_0, %c0_i32_1 : i32, i32, i32, i32
  }
}

</mosaic_0001>

<bundles_post_ra>
// kernel: tpu_custom_call.1
= control target key start
LH: loop header
LB: loop body
LE: loop exit
PB: predicated region body
PF: predicated region fallthrough
CT: control target
= control target key end

     0   :  { %s2324_s0 = inlined_call_operand.hbm [shape: f32[2,8,32], index: 0, kind: input, shape index: {}]   ;;  %s2325_s1 = inlined_call_operand.hbm [shape: f32[32,96], index: 1, kind: input, shape index: {}]   ;;  %s2326_s2 = inlined_call_operand.vmem [shape: f32[1,96], index: 2, kind: input, shape index: {}]   ;;  %s2327_s3 = inlined_call_operand.hbm [shape: f32[32,32], index: 3, kind: input, shape index: {}]   ;;  %s2328_s4 = inlined_call_operand.vmem [shape: f32[1,32], index: 4, kind: input, shape index: {}]   ;;  %s2329_s5 = inlined_call_operand.hbm [shape: f32[2,8,32], index: 5, kind: output, shape index: {0}]   ;;  %s2330_s6 = inlined_call_operand.hbm [shape: f32[2,4,8,8], index: 6, kind: output, shape index: {1}]  }
   0x1   :  { %2335 = sst [smem:[#allocation15_spill]] %s2325_s1 }
   0x2   :  { %12 = vsyncpa [#allocation3], 0 }
   0x3   :  { %14 = vsyncpa [#allocation3 + $0x1], 0 }
   0x4   :  { %15 = vsyncpa [#allocation6], 0 }
   0x5   :  { %16 = vsyncpa [#allocation4], 0 }
   0x6   :  { %18 = vsyncpa [#allocation4 + $0x1], 0 }
   0x7   :  { %19 = vsyncpa [#allocation10], 0 }
   0x8   :  { %21 = vsyncpa [#allocation10 + $0x1], 0  ;;  %s2015_s21 = smov 0   ;;  %s2017_s22 = smov 0  }
   0x9   :  { %s2019_s23 = smov 0   ;;  %s2021_s24 = smov 0  }
   0xa LB: > { %s2036_s25 = sadd.s32 4294967295, %s1956_s24   ;;  %s1530_s26 = sadd.s32 4294967294, %s1956_s24   ;;  %s1956_s24 = sphi %s2021_s24, %s2354_s24   ;;  %s1952_s23 = sphi %s2019_s23, %s2353_s23   ;;  %s1948_s22 = sphi %s2017_s22, %s2352_s22   ;;  %s1944_s21 = sphi %s2015_s21, %s2351_s21  }
   0xb   : > { %p47_p0 = scmp.ne.s32.totalorder %s1948_s22, %s1944_s21  ;;  %p2331_p1 = scmp.eq.s32.totalorder %s2036_s25, 0 }
   0xc   : > { %p161_p3 = scmp.eq.s32.totalorder %s1530_s26, 1  ;;  %p1531_p5 = scmp.ge.s32.totalorder %s1956_s24, 1 }
   0xd   : > { %p2045_p4 = por %p2331_p1, %p47_p0  ;;  %p194_p7 = scmp.lt.s32.totalorder %s1956_s24, 3 }
   0xe   : > { %p2050_p6 = por %p161_p3, %p47_p0  ;;  %s1958_s30 = smov [#allocation5]  }
   0xf   : > { %s2336_s27 = scalar_select %p2045_p4, 1, 0 }
  0x10   : > { %s2337_s28 = scalar_select %p2050_p6, 1, 0 }
  0x11   : > { %p2055_p8 = pnand %p1531_p5, %p194_p7  ;;  %s206_s7 = sshll.u32 %s1958_s30, 4  ;;  %s207_s7 = int_to_ptr.vmem [resolvable:$true] %s206_s7 }
  0x12   : > { %s1959_s9 = smov [#allocation7]   ;;  %s1789_s11 = scalar_lea.vmem %s207_s7, 512 }
  0x13   : > { %s2338_s29 = scalar_select %p2055_p8, 1, 0 }
  0x14   : > { %p1687_p9 = pneg %p2055_p8  ;;  %s222_s10 = sshll.u32 %s1959_s9, 4  ;;  %s223_s10 = int_to_ptr.vmem [resolvable:$true] %s222_s10 }
  0x15   : > { %p1790_p13 = scmp.ne.s32.totalorder %s207_s7, %s1789_s11  ;;  %p1797_p5 = scmp.lt.s32.totalorder %s207_s7, %s207_s7 }
  0x16   : > { %p2064_p11 = pnand %p1687_p9, %p2331_p1  ;;  %p1798_p7 = scmp.lt.s32.totalorder %s1789_s11, %s1789_s11 }
  0x18   : > { %p1780_p12 = pneg %p2064_p11  ;;  %p1799_p10 = por %p1798_p7, %p1797_p5 }
  0x1a   : > { %p1792_p0 = pnand %p1790_p13, %p1780_p12 }
  0x1c   : > { %p1793_p3 = pneg %p1792_p0 }
  0x1e   : > { %p1800_p9 = pnand %p1799_p10, %p1793_p3 }
  0x20   : > { %1803 = shalt.err (!%p1800_p9)
}
  0x21   : > { %s1960_s12 = smov 128   ;;  %s1961_s13 = smov 8  }
  0x22   : > { %s2340_s1 = sld [smem:[#allocation15_spill]]  ;;  %s1815_s16 = scalar_lea.vmem %s223_s10, 512 }
  0x23   : > { %p1816_p1 = scmp.ne.s32.totalorder %s223_s10, %s1815_s16  ;;  %p1823_p2 = scmp.lt.s32.totalorder %s223_s10, %s223_s10 }
  0x24   : > { %p1824_p6 = scmp.lt.s32.totalorder %s1815_s16, %s1815_s16 }
  0x25   : > { %p1818_p13 = pnand %p1816_p1, %p1780_p12 }
  0x26   : > { %p1825_p5 = por %p1824_p6, %p1823_p2 }
  0x27   : > { %p1819_p0 = pneg %p1818_p13 }
  0x28   : > { %1690 = dma.hbm_to_vmem [thread:$0]  (!%p2064_p11), %s2340_s1, 512, %s207_s7, [#allocation6], %s1960_s12, %s1960_s12, %s1961_s13  }
  0x29   : > { %p1826_p10 = pnand %p1825_p5, %p1819_p0 }
  0x2b   : > { %1829 = shalt.err (!%p1826_p10)
}
  0x2c   : > { %1693 = dma.hbm_to_vmem [thread:$0]  (!%p2064_p11), %s2327_s3, 512, %s223_s10, [#allocation6], %s1960_s12, %s1960_s12, %s1961_s13  }
  0x2d   : > { %s2087_s19 = sadd.s32 1, %s1956_s24   ;;  %s34_s20 = sadd.s32 1, %s1952_s23 }
  0x2e   : > { %s31_s26 = ssub.s32 %s1956_s24, %s2087_s19  ;;  %p41_p1 = scmp.ne.s32.totalorder %s1952_s23, %s1948_s22 }
  0x2f   : > { %p32_p2 = scmp.eq.s32.totalorder %s31_s26, 0  ;;  %p42_p6 = scmp.eq.s32.totalorder %s1956_s24, 0 }
  0x30   : > { %p2341_p12 = scmp.eq.s32.totalorder %s2036_s25, 1  ;;  %p1707_p7 = scmp.lt.s32.totalorder %s1956_s24, 2 }
  0x31   : > { %s2103_s7 = scalar_select %p32_p2, %s1952_s23, %s34_s20  }
  0x32   : > { %p2097_p3 = por %p2341_p12, %p41_p1  ;;  %p43_p9 = por %p42_p6, %p41_p1 }
  0x33   : > { %s239_s8 = sand.u32 1, %s1952_s23   ;;  %s1536_s10 = sshll.u32 %s1956_s24, 7 }
  0x34   : > { %s2342_s30 = scalar_select %p2097_p3, 1, 0 }
  0x35   : > { %s1535_s9 = sshll.u32 %s239_s8, 3  ;;  %s2110_s13 = scalar_lea.hbm %s2324_s0, %s1536_s10 }
  0x36   : > { %s243_s14 = scalar_lea.vmem [#allocation2], %s1535_s9  ;;  %p2112_p11 = pnand %p1707_p7, %p43_p9 }
  0x37   : > { %s250_s15 = sshll.u32 %s243_s14, 4  ;;  %s240_s17 = scalar_lea.sflag [#allocation3], %s239_s8  ;;  %s251_s15 = int_to_ptr.vmem [resolvable:$true] %s250_s15 }
  0x38   : > { %s1830_s18 = scalar_lea.hbm %s2110_s13, 128  ;;  %p1832_p0 = pneg %p2112_p11 }
  0x39   : > { %p1831_p13 = scmp.ne.s32.totalorder %s2110_s13, %s1830_s18  ;;  %s1835_s10 = scalar_lea.hbm %s2324_s0, 256 }
  0x3a   : > { %p1836_p1 = scmp.lt.s32.totalorder %s2110_s13, %s2324_s0  ;;  %p1837_p2 = scmp.lt.s32.totalorder %s1835_s10, %s1830_s18 }
  0x3b   : > { %p1833_p5 = pnand %p1832_p0, %p1831_p13 }
  0x3c   : > { %p1838_p6 = por %p1837_p2, %p1836_p1 }
  0x3d   : > { %p1834_p10 = pneg %p1833_p5 }
  0x3f   : > { %p1839_p12 = pnand %p1838_p6, %p1834_p10 }
  0x41   : > { %1842 = shalt.err (!%p1839_p12)
}
  0x42   : > { %s1843_s12 = scalar_lea.vmem %s251_s15, 128  ;;  %s1962_s8 = smov [#allocation2]  }
  0x43   : > { %p1844_p7 = scmp.ne.s32.totalorder %s251_s15, %s1843_s12  ;;  %s1848_s14 = sshll.u32 %s1962_s8, 4  ;;  %s1849_s14 = int_to_ptr.vmem [resolvable:$false] %s1848_s14 }
  0x44   : > { %s1850_s1 = scalar_lea.vmem %s1849_s14, 256  ;;  %p1851_p13 = scmp.lt.s32.totalorder %s251_s15, %s1849_s14 }
  0x45   : > { %p1846_p9 = pnand %p1844_p7, %p1832_p0  ;;  %p1852_p5 = scmp.lt.s32.totalorder %s1850_s1, %s1843_s12 }
  0x47   : > { %p1847_p3 = pneg %p1846_p9  ;;  %p1853_p4 = por %p1852_p5, %p1851_p13 }
  0x49   : > { %p1854_p8 = pnand %p1853_p4, %p1847_p3 }
  0x4b   : > { %1857 = shalt.err (!%p1854_p8)
}
  0x4c   : > { %1697 = dma.hbm_to_vmem [thread:$0]  (!%p2112_p11), %s2110_s13, 128, %s251_s15, %s240_s17  }
  0x4d   : > { %p2344_p10 = scmp.ne.s32.totalorder %s2338_s29, 0 }
  0x4e   : > { %s2133_s18 = sand.u32 (!%p2344_p10), 1, %s1948_s22   ;;  %p2345_p4 = scmp.ne.s32.totalorder (!%p2344_p10), %s2336_s27, 0 }
  0x4f   : > { %259 = sbr.rel (%p2344_p10) target bundleno = 2226 (0x8b2), region = 40  ;;  %s1538_s20 = sshll.u32 (!%p2344_p10), %s2133_s18, 3 }
  0x50   : > { %s262_s26 = scalar_lea.sflag (!%p2344_p10), [#allocation3], %s2133_s18  ;;  %s265_s1 = scalar_lea.vmem (!%p2344_p10), [#allocation2], %s1538_s20 }
  0x54   : > { %1927 = dma.done.wait (%p2345_p4), %s262_s26, 128  }
  0x55   : > { %1929 = vsyncadd (%p2345_p4), %s262_s26, 4294967168  ;;  %p2346_p8 = scmp.eq.s32.totalorder %s2036_s25, 0 }
  0x57   : > { %1931 = dma.done.wait (%p2346_p8), [#allocation6], 1024   ;;  %p2347_p3 = pmov %p2346_p8 }
  0x58   : > { %v1963_v0 = vmov 0.0   ;;  %vm1964_vm0 = vmmov 0   ;;  %v311_v1 = vld [vmem:[#allocation5 + $0x18] sm:$0xff]  ;;  %v310_v2 = vld [vmem:[#allocation5 + $0x10] sm:$0xff]  ;;  %v309_v3 = vld [vmem:[#allocation5 + $0x8] sm:$0xff]  ;;  %vm319_vm1 = vcmask 261120  }
  0x59   : > { %1933 = vsyncadd (%p2347_p3), [#allocation6], 4294966272  ;;  %1602 = vmatprep.subr.mxu0 %v1963_v0  ;;  %1610 = vmatprep.mubr.msk.f32.mxu0 %vm1964_vm0, %v1963_v0  ;;  %v308_v4 = vld [vmem:[#allocation5] sm:$0xff]  ;;  %v307_v5 = vld [vmem:[%s265_s1] sm:$0xff]  ;;  %s1965_s13 = smov 112   ;;  %s1966_s15 = smov 120  }
  0x5a   : > { %1613 = vmatprep.subr.mxu1 %v1963_v0  ;;  %1615 = vmatprep.mubr.msk.f32.mxu1 %vm1964_vm0, %v1963_v0  ;;  %v1543_v6 = vld [vmem:[%s2326_s2] ss:$0 sm:$0xff]  ;;  %s1967_s16 = smov 96   ;;  %s1968_s17 = smov 104   ;;  %vm404_vm2 = vcmask 64512   ;;  %v569_v23 = vld [vmem:[#allocation7] sm:$0xff] }
  0x5b   : > { %1603 = vmatpush3.msra.mxu0 %v311_v1  ;;  %s1969_s10 = smov 72   ;;  %s1542_s11 = sshll.u32 %s2133_s18, 5  ;;  %v812_v43 = vld [vmem:[#allocation7 + $0x8] sm:$0xff]  ;;  %v1545_v61 = vld [vmem:[%s2328_s4] ss:$0 sm:$0xff] }
  0x5c   : > { %1604 = vmatprep.subr.mxu0 %v1963_v0  ;;  %s2192_s9 = scalar_lea.vmem [#allocation9], %s1542_s11  ;;  %s1970_s12 = smov 88  }
  0x5d   : > { %1605 = vmatpush3.msra.mxu0 %v310_v2  ;;  %s1971_s8 = smov 80   ;;  %s1972_s14 = smov 64  }
  0x5e   : > { %1606 = vmatprep.subr.mxu0 %v1963_v0  ;;  %s1973_s26 = smov 56   ;;  %s1974_s1 = smov 48  }
  0x5f   : > { %1607 = vmatpush3.msra.mxu0 %v309_v3  ;;  %v1055_v3 = vld [vmem:[#allocation7 + $0x10] sm:$0xff]  ;;  %p2348_p0 = scmp.ne.s32.totalorder %s2342_s30, 0 }
  0x60   : > { %1608 = vmatprep.subr.mxu0 %v1963_v0 }
  0x61   : > { %1609 = vmatpush3.msra.mxu0 %v308_v4 }
  0x62   : > { %1611 = vmatmul.mubr.msk.f32.vlgmr.msra.gmra.mxu0 %vm319_vm1, %v307_v5  ;;  %1623 = vmatprep.subr.mxu0 %v1963_v0 }
  0x63   : > { %1625 = vmatprep.mubr.msk.f32.mxu0 %vm1964_vm0, %v1963_v0  ;;  %1624 = vmatpush3.msra.mxu0 %v569_v23 }
  0x64   : > { %1633 = vmatprep.subr.mxu0 %v1963_v0 }
 0x122   : > { %v389_v7 = vpop.f32.mrf.mxu0 }
 0x123   : > { %v2163_v8 = vadd.f32 %v1543_v6, %v389_v7 }
 0x124   : > { %v1612_v9 = vpop.f32.mrf.mxu0 }
 0x125   : > { %490 = vrot.lane.b32.xlu1 %v2163_v8, %s1965_s13  ;;  %402 = vrot.lane.b32.xlu0 %v2163_v8, %s1966_s15  ;;  %v2169_v10 = vmul.f32 0.35355338, %v2163_v8  ;;  %s1975_s13 = smov 40   ;;  %s1572_s15 = sshll.u32 %s2036_s25, 9 }
 0x126   : > { %s2253_s11 = scalar_lea.hbm %s2330_s6, %s1572_s15 }
 0x129   : > { %646 = vrot.lane.b32.xlu1 %v2163_v8, %s1967_s16  ;;  %s1406_s16 = sshll.u32 %s2192_s9, 4  ;;  %s2255_s16 = int_to_ptr.vmem [resolvable:$true] %s1406_s16 }
 0x12d   : > { %644 = vrot.lane.b32.xlu1 %v2169_v10, %s1968_s17 }
 0x197   : > { %v403_v11 = vpop.permute.xlu0 %402  ;;  %v491_v12 = vpop.permute.xlu1 %490 }
 0x198   : > { %1614 = vmatpush3.xpose.msk.msra.mxu1 %vm404_vm2, %v403_v11 }
 0x199   : > { %1618 = vmatprep.subr.mxu1 %v1963_v0 }
 0x19b   : > { %1616 = vmatmul.mubr.msk.f32.vlgmr.msra.gmra.mxu1 %vm404_vm2, %v2169_v10  ;;  %v647_v19 = vpop.permute.xlu1 %646 }
 0x19c   : > { %1619 = vmatpush3.msra.mxu1 %v491_v12  ;;  %1620 = vmatprep.mubr.msk.f32.mxu1 %vm1964_vm0, %v1963_v0 }
 0x19d   : > { %1628 = vmatprep.subr.mxu1 %v1963_v0 }
 0x19f   : > { %v645_v22 = vpop.permute.xlu1 %644 }
 0x25b   : > { %v476_v13 = vpop.f32.mrf.mxu1 }
 0x25c   : > { %v480_v14 = vsel %vm404_vm2, %v476_v13, -inf }
 0x25d   : > { %481 = vmax.xlane.f32.xlu0 %v480_v14  ;;  %v1617_v15 = vpop.f32.mrf.mxu1 }
 0x2e6   : > { %v482_v16 = vpop.xlane.xlu0 %481 }
 0x2e7   : > { %v483_v17 = vsub.f32 %v476_v13, %v482_v16 }
 0x2e9   : > { %v484_v18 = vmul.f32 1.442695, %v483_v17 }
 0x2eb   : > { %1762 = vpow2.f32 %v484_v18 }
 0x2f8   : > { %v1763_v20 = vpop.eup %1762 }
 0x2f9   : > { %1621 = vmatmul.mubr.msk.f32.vlgmr.msra.gmra.mxu1 %vm404_vm2, %v1763_v20  ;;  %v486_v21 = vsel %vm404_vm2, %v1763_v20, 0.0 }
 0x2fa   : > { %1629 = vmatpush3.xpose.msk.msra.mxu1 %vm404_vm2, %v647_v19  ;;  %487 = vadd.xlane.f32.xlu1 %v486_v21 }
 0x2fb   : > { %1630 = vmatprep.mubr.msk.f32.mxu1 %vm1964_vm0, %v1963_v0  ;;  %1638 = vmatprep.subr.mxu1 %v1963_v0 }
 0x2fd   : > { %1631 = vmatmul.mubr.msk.f32.vlgmr.msra.gmra.mxu1 %vm404_vm2, %v645_v22 }
 0x2fe   : > { %1640 = vmatprep.mubr.msk.f32.mxu1 %vm1964_vm0, %v1963_v0  ;;  %1639 = vmatpush3.msra.mxu1 %v812_v43 }
 0x2ff   : > { %1648 = vmatprep.subr.mxu1 %v1963_v0 }
 0x30b   : > { %889 = vrot.lane.b32.xlu1 %v2163_v8, %s1969_s10 }
 0x383   : > { %v488_v24 = vpop.xlane.xlu1 %487 }
 0x384   : > { %1764 = vrcp.f32 %v488_v24 }
 0x387   : > { %v890_v38 = vpop.permute.xlu1 %889 }
 0x391   : > { %v1765_v25 = vpop.eup %1764 }
 0x392   : > { %v567_v26 = vmul.f32 %v1765_v25, %v1763_v20 }
 0x394   : > { %568 = vst.msk [vmem:[%s2192_s9] sm:$0xff] %vm404_vm2, %v567_v26 }
 0x3b9   : > { %v562_v27 = vpop.f32.mrf.mxu1 }
 0x3ba   : > { %v566_v28 = vmul.f32 %v1765_v25, %v562_v27 }
 0x3bb   : > { %v1622_v29 = vpop.f32.mrf.mxu1 }
 0x3bc   : > { %1626 = vmatmul.mubr.msk.f32.vlgmr.msra.gmra.mxu0 %vm404_vm2, %v566_v28 }
 0x3bd   : > { %v718_v30 = vpop.f32.mrf.mxu1  ;;  %1635 = vmatprep.mubr.msk.f32.mxu0 %vm1964_vm0, %v1963_v0 }
 0x3be   : > { %v722_v31 = vsel %vm404_vm2, %v718_v30, -inf }
 0x3bf   : > { %723 = vmax.xlane.f32.xlu0 %v722_v31  ;;  %v1632_v32 = vpop.f32.mrf.mxu1 }
 0x3d5   : > { %732 = vrot.lane.b32.xlu0 %v2163_v8, %s1970_s12  ;;  %s1380_s12 = scalar_lea.sflag [#allocation10], %s2133_s18 }
 0x3d9   : > { %887 = vrot.lane.b32.xlu0 %v2169_v10, %s1971_s8  ;;  %s1858_s8 = scalar_lea.vmem %s2255_s16, 512 }
 0x3da   : > { %p1859_p11 = scmp.ne.s32.totalorder %s2255_s16, %s1858_s8 }
 0x3dc   : > { %p1860_p1 = pnand %p1859_p11, %p2348_p0 }
 0x3de   : > { %p1861_p2 = pneg %p1860_p1 }
 0x448   : > { %v724_v33 = vpop.xlane.xlu0 %723 }
 0x449   : > { %v725_v34 = vsub.f32 %v718_v30, %v724_v33 }
 0x44b   : > { %v726_v35 = vmul.f32 1.442695, %v725_v34 }
 0x44c   : > { %v733_v36 = vpop.permute.xlu0 %732 }
 0x44d   : > { %1766 = vpow2.f32 %v726_v35  ;;  %1634 = vmatpush3.msra.mxu0 %v733_v36 }
 0x44e   : > { %1643 = vmatprep.subr.mxu0 %v1963_v0 }
 0x450   : > { %v888_v40 = vpop.permute.xlu0 %887 }
 0x45a   : > { %v1767_v37 = vpop.eup %1766 }
 0x45b   : > { %1636 = vmatmul.mubr.msk.f32.vlgmr.msra.gmra.mxu0 %vm404_vm2, %v1767_v37  ;;  %v728_v39 = vsel %vm404_vm2, %v1767_v37, 0.0 }
 0x45c   : > { %1644 = vmatpush3.xpose.msk.msra.mxu0 %vm404_vm2, %v890_v38  ;;  %729 = vadd.xlane.f32.xlu0 %v728_v39 }
 0x45d   : > { %1645 = vmatprep.mubr.msk.f32.mxu0 %vm1964_vm0, %v1963_v0  ;;  %1653 = vmatprep.subr.mxu0 %v1963_v0 }
 0x45f   : > { %1646 = vmatmul.mubr.msk.f32.vlgmr.msra.gmra.mxu0 %vm404_vm2, %v888_v40 }
 0x460   : > { %1655 = vmatprep.mubr.msk.f32.mxu0 %vm1964_vm0, %v1963_v0  ;;  %1654 = vmatpush3.msra.mxu0 %v1055_v3 }
 0x461   : > { %1663 = vmatprep.subr.mxu0 %v1963_v0 }
 0x472   : > { %975 = vrot.lane.b32.xlu0 %v2163_v8, %s1972_s14  ;;  %s1976_s14 = smov [#allocation9]  }
 0x476   : > { %1130 = vrot.lane.b32.xlu0 %v2169_v10, %s1973_s26  ;;  %s1862_s26 = sshll.u32 %s1976_s14, 4  ;;  %s1863_s26 = int_to_ptr.vmem [resolvable:$false] %s1862_s26 }
 0x477   : > { %p1865_p6 = scmp.lt.s32.totalorder %s2255_s16, %s1863_s26 }
 0x47c   : > { %v639_v41 = vpop.f32.mrf.mxu0 }
 0x47d   : > { %v643_v62 = vadd.f32 %v1545_v61, %v639_v41 }
 0x47e   : > { %v1627_v42 = vpop.f32.mrf.mxu0 }
 0x4e5   : > { %v730_v44 = vpop.xlane.xlu0 %729 }
 0x4e6   : > { %1768 = vrcp.f32 %v730_v44 }
 0x4e9   : > { %v976_v50 = vpop.permute.xlu0 %975 }
 0x4ed   : > { %v1131_v60 = vpop.permute.xlu0 %1130 }
 0x4f3   : > { %v1769_v45 = vpop.eup %1768 }
 0x4f4   : > { %v809_v46 = vmul.f32 %v1769_v45, %v1767_v37 }
 0x4f6   : > { %1553 = vst.msk [vmem:[%s2192_s9 + $0x8] sm:$0xff] %vm404_vm2, %v809_v46 }
 0x51b   : > { %v804_v47 = vpop.f32.mrf.mxu0 }
 0x51c   : > { %v808_v48 = vmul.f32 %v1769_v45, %v804_v47 }
 0x51d   : > { %v1637_v49 = vpop.f32.mrf.mxu0 }
 0x51e   : > { %1641 = vmatmul.mubr.msk.f32.vlgmr.msra.gmra.mxu1 %vm404_vm2, %v808_v48 }
 0x51f   : > { %1649 = vmatpush3.msra.mxu1 %v976_v50  ;;  %v961_v51 = vpop.f32.mrf.mxu0  ;;  %1650 = vmatprep.mubr.msk.f32.mxu1 %vm1964_vm0, %v1963_v0 }
 0x520   : > { %v965_v52 = vsel %vm404_vm2, %v961_v51, -inf  ;;  %1658 = vmatprep.subr.mxu1 %v1963_v0 }
 0x521   : > { %966 = vmax.xlane.f32.xlu1 %v965_v52  ;;  %v1647_v53 = vpop.f32.mrf.mxu0 }
 0x532   : > { %1132 = vrot.lane.b32.xlu1 %v2163_v8, %s1974_s1 }
 0x5aa   : > { %v967_v54 = vpop.xlane.xlu1 %966 }
 0x5ab   : > { %v968_v55 = vsub.f32 %v961_v51, %v967_v54 }
 0x5ad   : > { %v969_v56 = vmul.f32 1.442695, %v968_v55 }
 0x5ae   : > { %v1133_v58 = vpop.permute.xlu1 %1132 }
 0x5af   : > { %1770 = vpow2.f32 %v969_v56 }
 0x5bc   : > { %v1771_v57 = vpop.eup %1770 }
 0x5bd   : > { %1651 = vmatmul.mubr.msk.f32.vlgmr.msra.gmra.mxu1 %vm404_vm2, %v1771_v57  ;;  %v971_v59 = vsel %vm404_vm2, %v1771_v57, 0.0 }
 0x5be   : > { %1659 = vmatpush3.xpose.msk.msra.mxu1 %vm404_vm2, %v1133_v58  ;;  %972 = vadd.xlane.f32.xlu1 %v971_v59 }
 0x5bf   : > { %1660 = vmatprep.mubr.msk.f32.mxu1 %vm1964_vm0, %v1963_v0  ;;  %1668 = vmatprep.subr.mxu1 %v1963_v0 }
 0x5c1   : > { %1661 = vmatmul.mubr.msk.f32.vlgmr.msra.gmra.mxu1 %vm404_vm2, %v1131_v60 }
 0x5c2   : > { %1670 = vmatprep.mubr.msk.f32.mxu1 %vm1964_vm0, %v1963_v0 }
 0x5de   : > { %v882_v63 = vpop.f32.mrf.mxu1 }
 0x5df   : > { %v886_v1 = vadd.f32 %v882_v63, %v643_v62 }
 0x5e0   : > { %v1642_v2 = vpop.f32.mrf.mxu1 }
 0x647   : > { %v973_v4 = vpop.xlane.xlu1 %972 }
 0x648   : > { %1772 = vrcp.f32 %v973_v4 }
 0x655   : > { %v1773_v5 = vpop.eup %1772 }
 0x656   : > { %v1052_v6 = vmul.f32 %v1773_v5, %v1771_v57 }
 0x658   : > { %1558 = vst.msk [vmem:[%s2192_s9 + $0x10] sm:$0xff] %vm404_vm2, %v1052_v6 }
 0x67d   : > { %v1047_v7 = vpop.f32.mrf.mxu1 }
 0x67e   : > { %v1051_v9 = vmul.f32 %v1773_v5, %v1047_v7 }
 0x67f   : > { %v1652_v10 = vpop.f32.mrf.mxu1 }
 0x680   : > { %1656 = vmatmul.mubr.msk.f32.vlgmr.msra.gmra.mxu0 %vm404_vm2, %v1051_v9 }
 0x681   : > { %v1204_v11 = vpop.f32.mrf.mxu1  ;;  %1665 = vmatprep.mubr.msk.f32.mxu0 %vm1964_vm0, %v1963_v0  ;;  %v1298_v0 = vld [vmem:[#allocation7 + $0x18] sm:$0xff] }
 0x682   : > { %v1208_v12 = vsel %vm404_vm2, %v1204_v11, -inf  ;;  %1669 = vmatpush3.msra.mxu1 %v1298_v0 }
 0x683   : > { %1209 = vmax.xlane.f32.xlu0 %v1208_v12  ;;  %v1662_v13 = vpop.f32.mrf.mxu1 }
 0x699   : > { %1218 = vrot.lane.b32.xlu0 %v2163_v8, %s1975_s13 }
 0x70c   : > { %v1210_v14 = vpop.xlane.xlu0 %1209 }
 0x70d   : > { %v1211_v15 = vsub.f32 %v1204_v11, %v1210_v14 }
 0x70f   : > { %v1212_v16 = vmul.f32 1.442695, %v1211_v15 }
 0x710   : > { %v1219_v17 = vpop.permute.xlu0 %1218 }
 0x711   : > { %1774 = vpow2.f32 %v1212_v16  ;;  %1664 = vmatpush3.msra.mxu0 %v1219_v17 }
 0x71e   : > { %v1775_v18 = vpop.eup %1774 }
 0x71f   : > { %1666 = vmatmul.mubr.msk.f32.vlgmr.msra.gmra.mxu0 %vm404_vm2, %v1775_v18  ;;  %v1214_v19 = vsel %vm404_vm2, %v1775_v18, 0.0 }
 0x720   : > { %1215 = vadd.xlane.f32.xlu1 %v1214_v19 }
 0x740   : > { %v1125_v20 = vpop.f32.mrf.mxu0 }
 0x741   : > { %v1129_v8 = vadd.f32 %v1125_v20, %v886_v1 }
 0x742   : > { %v1657_v21 = vpop.f32.mrf.mxu0 }
 0x7a9   : > { %v1216_v22 = vpop.xlane.xlu1 %1215 }
 0x7aa   : > { %1776 = vrcp.f32 %v1216_v22 }
 0x7b7   : > { %v1777_v23 = vpop.eup %1776 }
 0x7b8   : > { %v1295_v24 = vmul.f32 %v1777_v23, %v1775_v18 }
 0x7ba   : > { %1563 = vst.msk [vmem:[%s2192_s9 + $0x18] sm:$0xff] %vm404_vm2, %v1295_v24  ;;  %s1864_s9 = scalar_lea.vmem %s1863_s26, 1024 }
 0x7bb   : > { %p1866_p12 = scmp.lt.s32.totalorder %s1864_s9, %s1858_s8 }
 0x7bd   : > { %p1867_p7 = por %p1866_p12, %p1865_p6 }
 0x7bf   : > { %p1868_p9 = pnand %p1867_p7, %p1861_p2 }
 0x7df   : > { %v1290_v25 = vpop.f32.mrf.mxu0 }
 0x7e0   : > { %v1294_v26 = vmul.f32 %v1777_v23, %v1290_v25 }
 0x7e1   : > { %v1667_v27 = vpop.f32.mrf.mxu0 }
 0x7e2   : > { %1671 = vmatmul.mubr.msk.f32.vlgmr.msra.gmra.mxu1 %vm404_vm2, %v1294_v26 }
 0x7e3   : > { %1871 = shalt.err (!%p1868_p9)
}
 0x7e4   : > { %s1872_s1 = scalar_lea.hbm %s2253_s11, 512  ;;  %s1876_s13 = scalar_lea.hbm %s2330_s6, 1024 }
 0x7e5   : > { %p1873_p13 = scmp.ne.s32.totalorder %s2253_s11, %s1872_s1  ;;  %p1877_p4 = scmp.lt.s32.totalorder %s2253_s11, %s2330_s6 }
 0x7e6   : > { %p1878_p8 = scmp.lt.s32.totalorder %s1876_s13, %s1872_s1 }
 0x7e7   : > { %p1874_p5 = pnand %p1873_p13, %p2348_p0 }
 0x7e8   : > { %p1879_p3 = por %p1878_p8, %p1877_p4 }
 0x7e9   : > { %p1875_p10 = pneg %p1874_p5 }
 0x7eb   : > { %p1880_p11 = pnand %p1879_p3, %p1875_p10 }
 0x7ed   : > { %1883 = shalt.err (!%p1880_p11)
}
 0x7ee   : > { %s1977_s10 = smov 128   ;;  %s1978_s8 = smov 8  }
 0x7ef   : > { %1684 = dma.vmem_to_hbm [thread:$0]  (%p2348_p0), %s2255_s16, 512, %s2253_s11, %s1380_s12, %s1977_s10, %s1977_s10, %s1978_s8  }
 0x7f0   : > { %s1567_s14 = sshll.u32 %s2036_s25, 7  ;;  %s299_s26 = scalar_lea.vmem [#allocation8], %s1538_s20 }
 0x7f1   : > { %s1393_s9 = sshll.u32 %s299_s26, 4  ;;  %s2286_s29 = scalar_lea.hbm %s2329_s5, %s1567_s14  ;;  %s1394_s9 = int_to_ptr.vmem [resolvable:$true] %s1393_s9 }
 0x7f2   : > { %s1375_s13 = scalar_lea.sflag [#allocation4], %s2133_s18  ;;  %s1884_s15 = scalar_lea.vmem %s1394_s9, 128 }
 0x7f3   : > { %p1885_p1 = scmp.ne.s32.totalorder %s1394_s9, %s1884_s15  ;;  %s1979_s25 = smov [#allocation8]  }
 0x7f4   : > { %s1888_s20 = sshll.u32 %s1979_s25, 4  ;;  %s1889_s20 = int_to_ptr.vmem [resolvable:$false] %s1888_s20 }
 0x7f5   : > { %p1886_p2 = pnand %p1885_p1, %p2348_p0  ;;  %s1890_s16 = scalar_lea.vmem %s1889_s20, 256 }
 0x7f6   : > { %p1891_p12 = scmp.lt.s32.totalorder %s1394_s9, %s1889_s20  ;;  %p1892_p7 = scmp.lt.s32.totalorder %s1890_s16, %s1884_s15 }
 0x7f7   : > { %p1887_p6 = pneg %p1886_p2 }
 0x7f8   : > { %p1893_p9 = por %p1892_p7, %p1891_p12 }
 0x7fa   : > { %p1894_p13 = pnand %p1893_p9, %p1887_p6 }
 0x8a2   : > { %v1368_v28 = vpop.f32.mrf.mxu1 }
 0x8a3   : > { %v1372_v29 = vadd.f32 %v1368_v28, %v1129_v8 }
 0x8a4   : > { %v1672_v30 = vpop.f32.mrf.mxu1 }
 0x8a5   : > { %1373 = vst.msk [vmem:[%s299_s26] sm:$0xff] %vm319_vm1, %v1372_v29 }
 0x8a6   : > { %1897 = shalt.err (!%p1894_p13)
}
 0x8a7   : > { %s1898_s11 = scalar_lea.hbm %s2286_s29, 128  ;;  %s1902_s17 = scalar_lea.hbm %s2329_s5, 256 }
 0x8a8   : > { %p1899_p5 = scmp.ne.s32.totalorder %s2286_s29, %s1898_s11  ;;  %p1903_p8 = scmp.lt.s32.totalorder %s2286_s29, %s2329_s5 }
 0x8a9   : > { %p1904_p3 = scmp.lt.s32.totalorder %s1902_s17, %s1898_s11 }
 0x8aa   : > { %p1900_p10 = pnand %p1899_p5, %p2348_p0 }
 0x8ab   : > { %p1905_p11 = por %p1904_p3, %p1903_p8 }
 0x8ac   : > { %p1901_p4 = pneg %p1900_p10 }
 0x8ae   : > { %p1906_p1 = pnand %p1905_p11, %p1901_p4 }
 0x8b0   : > { %1909 = shalt.err (!%p1906_p1)
}
 0x8b1   : > { %1683 = dma.vmem_to_hbm [thread:$0]  (%p2348_p0), %s1394_s9, 128, %s2286_s29, %s1375_s13  }
 0x8b2 PF: > { %s1421_s14 = sand.u32 1, %s1944_s21   ;;  %p2349_p2 = scmp.ne.s32.totalorder %s2337_s28, 0 }
 0x8b3   : > { %p2350_p6 = scmp.ge.s32.totalorder %s1956_s24, 2  ;;  %s1422_s26 = scalar_lea.sflag [#allocation4], %s1421_s14 }
 0x8b5   : > { %p1699_p12 = pnand %p2350_p6, %p2349_p2 }
 0x8b7   : > { %p1700_p7 = pneg %p1699_p12 }
 0x8b9   : > { %1935 = dma.done.wait (%p1700_p7), %s1422_s26, 128  }
 0x8ba   : > { %1937 = vsyncadd (%p1700_p7), %s1422_s26, 4294967168  ;;  %s1431_s1 = scalar_lea.sflag [#allocation10], %s1421_s14 }
 0x8bb   : > { %1939 = dma.done.wait (%p1700_p7), %s1431_s1, 512  }
 0x8bc   : > { %1941 = vsyncadd (%p1700_p7), %s1431_s1, 4294966784  ;;  %p24_p0 = scmp.ge.s32.totalorder %s2087_s19, 4   ;;  %s2351_s21 = smov %s1948_s22 }
 0x8bd   : > { %s2352_s22 = smov %s1952_s23  ;;  %s2353_s23 = smov %s2103_s7 }
 0x8be   : > { %s2354_s24 = smov %s2087_s19  ;;  %26 = sbr.rel (!%p24_p0) target bundleno = 10 (0xa), region = 113 }
 0x8c3   :  { %1436 = vsyncpa [#allocation3], 1 }
 0x8c4   :  { %1438 = vsyncpa [#allocation3 + $0x1], 1 }
 0x8c5   :  { %1439 = vsyncpa [#allocation6], 1 }
 0x8c6   :  { %1440 = vsyncpa [#allocation4], 1 }
 0x8c7   :  { %1442 = vsyncpa [#allocation4 + $0x1], 1 }
 0x8c8   :  { %1443 = vsyncpa [#allocation10], 1 }
 0x8c9   :  { %1445 = vsyncpa [#allocation10 + $0x1], 1 }

</bundles_post_ra>
